<compile_context>
chip_gen: v5e
topology: v5e:2x2
jax: 0.10.0
libtpu: 0.0.40
codegen_flags: <defaults>
</compile_context>

<pallas_src>
import functools

import jax
import jax.numpy as jnp
from jax.experimental import pallas as pl
from jax.experimental.pallas import tpu as pltpu


# -----------------------------------------------------------------------------
# Kernels
# -----------------------------------------------------------------------------
def _patch_embed_kernel(x_ref, w_ref, b_ref, o_ref):
    # x_ref: (tm, K)   w_ref: (K, Ep)   b_ref: (1, Ep)   o_ref: (tm, Ep)
    acc = jnp.dot(x_ref[...], w_ref[...],
                  preferred_element_type=jnp.float32,
                  precision=jax.lax.Precision.HIGHEST)
    acc = acc + b_ref[...].astype(jnp.float32)
    o_ref[...] = acc.astype(o_ref.dtype)


def _patch_embed_norm_kernel(x_ref, w_ref, b_ref, g_ref, bt_ref, o_ref, *,
                             eps, true_e):
    # Same projection with a fused LayerNorm over the (true) embedding dim.
    acc = jnp.dot(x_ref[...], w_ref[...],
                  preferred_element_type=jnp.float32,
                  precision=jax.lax.Precision.HIGHEST)
    acc = acc + b_ref[...].astype(jnp.float32)
    # Padded embedding columns (if any) are exactly zero (zero-padded weight and
    # bias), so plain sums divided by the true embed_dim give correct statistics.
    inv_e = jnp.float32(1.0 / true_e)
    mean = jnp.sum(acc, axis=-1, keepdims=True) * inv_e
    mean_sq = jnp.sum(acc * acc, axis=-1, keepdims=True) * inv_e
    var = mean_sq - mean * mean
    normed = (acc - mean) * jax.lax.rsqrt(var + eps)
    out = normed * g_ref[...].astype(jnp.float32) + bt_ref[...].astype(jnp.float32)
    o_ref[...] = out.astype(o_ref.dtype)


# -----------------------------------------------------------------------------
# Wrapper
# -----------------------------------------------------------------------------
def patch_embed_forward(x, weight, bias, patch_size,
                        gamma=None, beta=None, eps=1e-5,
                        row_tile=1024, compute_dtype=jnp.bfloat16,
                        out_dtype=None):
    """PatchEmbed forward.

    x:          (B, C, H, W)        NCHW input image
    weight:     (E, C, P, P)        Conv2d weight (kernel == stride == P)
    bias:       (E,)                Conv2d bias
    gamma/beta: (E,) or None        optional LayerNorm affine params
    row_tile:   tokens per grid step (512-2048 recommended; clamped to N)
    compute_dtype: matmul operand dtype (bf16 recommended; accumulation is f32)
    Returns (B, (H//P)*(W//P), E) in `out_dtype` (default: x.dtype).
    """
    B, C, H, W = x.shape
    P = int(patch_size)
    assert H % P == 0 and W % P == 0, "img size must be divisible by patch size"
    E = weight.shape[0]
    Ho, Wo = H // P, W // P
    N = B * Ho * Wo            # number of tokens across the batch
    K = C * P * P              # contraction dim (not padded: DMA-bound op)
    out_dtype = x.dtype if out_dtype is None else out_dtype

    # Pad the embedding dim to a multiple of 128 lanes -> unmasked vector stores.
    Ep = ((E + 127) // 128) * 128

    # ---- patchify: pure layout plumbing (no compute) --------------------------
    # (B,C,H,W) -> (B,Ho,Wo,C,P,P) -> (N, C*P*P), matching OIHW weight order.
    # allow_input_fusion below lets XLA fuse this transpose into the pallas_call
    # operand read instead of materialising a second copy of x in HBM.
    xp = jnp.transpose(x.reshape(B, C, Ho, P, Wo, P), (0, 2, 4, 1, 3, 5))
    x2 = xp.reshape(N, K).astype(compute_dtype)
    w2 = jnp.transpose(weight.reshape(E, K)).astype(compute_dtype)      # (K, E)
    b2 = bias.reshape(1, E).astype(jnp.float32)
    if Ep != E:
        w2 = jnp.pad(w2, ((0, 0), (0, Ep - E)))
        b2 = jnp.pad(b2, ((0, 0), (0, Ep - E)))

    # ---- row tiling ------------------------------------------------------------
    # Multi-step grid => pipelined DMA and megacore sharding; tile clamped so the
    # double-buffered working set stays far below VMEM even on v7x (64 MiB).
    if row_tile is None:
        row_tile = 1024
    if row_tile >= N:
        tm = N                                   # full dim: no multiple-of-8 need
    else:
        tm = min(N, max(8, (int(row_tile) // 8) * 8))
    grid = (pl.cdiv(N, tm),)

    x_spec = pl.BlockSpec((tm, K), lambda i: (i, 0))
    w_spec = pl.BlockSpec((K, Ep), lambda i: (0, 0))     # resident across steps
    vec_spec = pl.BlockSpec((1, Ep), lambda i: (0, 0))
    out_spec = pl.BlockSpec((tm, Ep), lambda i: (i, 0))

    if gamma is None:
        kernel = _patch_embed_kernel
        operands = (x2, w2, b2)
        in_specs = [x_spec, w_spec, vec_spec]
    else:
        g2 = gamma.reshape(1, E).astype(jnp.float32)
        bt2 = beta.reshape(1, E).astype(jnp.float32)
        if Ep != E:
            g2 = jnp.pad(g2, ((0, 0), (0, Ep - E)))
            bt2 = jnp.pad(bt2, ((0, 0), (0, Ep - E)))
        kernel = functools.partial(_patch_embed_norm_kernel, eps=eps, true_e=E)
        operands = (x2, w2, b2, g2, bt2)
        in_specs = [x_spec, w_spec, vec_spec, vec_spec, vec_spec]

    cparams = pltpu.CompilerParams(
        dimension_semantics=("parallel",),
        allow_input_fusion=[True] + [False] * (len(operands) - 1),
    )

    out2 = pl.pallas_call(
        kernel,
        out_shape=jax.ShapeDtypeStruct((N, Ep), out_dtype),
        grid=grid,
        in_specs=in_specs,
        out_specs=out_spec,
        compiler_params=cparams,
    )(*operands)

    if Ep != E:
        out2 = out2[:, :E]
    return out2.reshape(B, Ho * Wo, E)


# -----------------------------------------------------------------------------
# Pure-JAX reference (transcription of the PyTorch forward) for validation
# -----------------------------------------------------------------------------
def reference_forward(x, weight, bias, patch_size, gamma=None, beta=None, eps=1e-5):
    P = int(patch_size)
    out = jax.lax.conv_general_dilated(
        x, weight, window_strides=(P, P), padding="VALID",
        dimension_numbers=("NCHW", "OIHW", "NCHW"),
        precision=jax.lax.Precision.HIGHEST)
    out = out + bias[None, :, None, None]
    B, E = out.shape[0], out.shape[1]
    out = out.reshape(B, E, -1).transpose(0, 2, 1)        # (B, num_patches, E)
    if gamma is not None:
        mean = out.mean(-1, keepdims=True)
        var = ((out - mean) ** 2).mean(-1, keepdims=True)
        out = (out - mean) / jnp.sqrt(var + eps) * gamma + beta
    return out


if __name__ == "__main__":
    # Small shapes consistent with the module: patch_size=4, in_chans=3,
    # embed_dim=128 (lane-dense), 16x16 image, batch=2.
    B, C, H, W = 2, 3, 16, 16
    P, E = 4, 128

    key = jax.random.PRNGKey(0)
    kx, kw, kb, kg, kbt = jax.random.split(key, 5)
    x = jax.random.normal(kx, (B, C, H, W), jnp.float32)

    # Conv2d default init: U(-1/sqrt(fan_in), 1/sqrt(fan_in)), fan_in = C*P*P.
    fan_in = C * P * P
    bound = 1.0 / (fan_in ** 0.5)
    weight = jax.random.uniform(kw, (E, C, P, P), jnp.float32, -bound, bound)
    bias = jax.random.uniform(kb, (E,), jnp.float32, -bound, bound)
    gamma = 1.0 + 0.1 * jax.random.normal(kg, (E,), jnp.float32)
    beta = 0.1 * jax.random.normal(kbt, (E,), jnp.float32)

    num_patches = (H // P) * (W // P)                     # per image

    # Path 1: norm_layer=None, f32 compute.  row_tile=8 is ONLY to exercise a
    # real multi-step pipelined grid on this tiny example (production default
    # is 1024 tokens per step).
    out1 = patch_embed_forward(x, weight, bias, P,
                               row_tile=8, compute_dtype=jnp.float32)
    out1 = jax.block_until_ready(out1)
    ref1 = reference_forward(x, weight, bias, P)
    assert out1.shape == (B, num_patches, E), out1.shape
    err1 = float(jnp.max(jnp.abs(out1 - ref1)))
    assert jnp.allclose(out1, ref1, atol=1e-3, rtol=1e-3), f"no-norm max abs err {err1}"

    # Path 2: fused LayerNorm, default tiling, default bf16 matmul operands
    # (f32 accumulation + f32 LN math inside the kernel) -> looser tolerance.
    out2 = patch_embed_forward(x, weight, bias, P, gamma=gamma, beta=beta)
    out2 = jax.block_until_ready(out2)
    ref2 = reference_forward(x, weight, bias, P, gamma=gamma, beta=beta)
    assert out2.shape == (B, num_patches, E), out2.shape
    err2 = float(jnp.max(jnp.abs(out2 - ref2)))
    assert jnp.allclose(out2, ref2, atol=2e-2, rtol=2e-2), f"norm max abs err {err2}"

    print("KERNEL_OK")
</pallas_src>

<mosaic_0001>
module attributes {stable_mosaic.version = 11 : i64} {
  func.func @_patch_embed_kernel(%arg0: i32, %arg1: memref<8x48xf32, #tpu.memory_space<vmem>>, %arg2: memref<48x128xf32, #tpu.memory_space<vmem>>, %arg3: memref<1x128xf32, #tpu.memory_space<vmem>>, %arg4: memref<8x128xf32, #tpu.memory_space<vmem>>) attributes {dimension_semantics = [#tpu.dimension_semantics<parallel>], iteration_bounds = array<i64: 4>, scalar_prefetch = 0 : i64, scratch_operands = 0 : i64, tpu.core_type = #tpu.core_type<tc>, window_params = [{transform_indices = @transform_0, window_bounds = array<i64: 8, 48>}, {pipeline_mode = #tpu.pipeline_mode<synchronous>, transform_indices = @transform_1, window_bounds = array<i64: 48, 128>}, {pipeline_mode = #tpu.pipeline_mode<synchronous>, transform_indices = @transform_2, window_bounds = array<i64: 1, 128>}, {transform_indices = @transform_3, window_bounds = array<i64: 8, 128>}]} {
    %c0 = arith.constant 0 : index
    %c0_0 = arith.constant 0 : index
    %0 = vector.load %arg1[%c0, %c0_0] : memref<8x48xf32, #tpu.memory_space<vmem>>, vector<8x48xf32>
    %c0_1 = arith.constant 0 : index
    %c0_2 = arith.constant 0 : index
    %1 = vector.load %arg2[%c0_1, %c0_2] : memref<48x128xf32, #tpu.memory_space<vmem>>, vector<48x128xf32>
    %cst = arith.constant dense<0.000000e+00> : vector<8x128xf32>
    %2 = tpu.matmul %0, %1, %cst {dimension_numbers = #tpu.dot_dimension_numbers<[1], [0], [0], [1], [0, 0, 1, 1], [], []>, precision = #tpu.contract_precision<fp32>} : vector<8x48xf32>, vector<48x128xf32>, vector<8x128xf32> -> vector<8x128xf32>
    %c0_3 = arith.constant 0 : index
    %c0_4 = arith.constant 0 : index
    %3 = vector.load %arg3[%c0_3, %c0_4] : memref<1x128xf32, #tpu.memory_space<vmem>>, vector<1x128xf32>
    %4 = vector.broadcast %3 : vector<1x128xf32> to vector<8x128xf32>
    %5 = arith.addf %2, %4 : vector<8x128xf32>
    %c0_5 = arith.constant 0 : index
    %c0_6 = arith.constant 0 : index
    %6 = vector.load %arg4[%c0_5, %c0_6] : memref<8x128xf32, #tpu.memory_space<vmem>>, vector<8x128xf32>
    tpu.vector_store %arg4[%c0_5, %c0_6], %5 {strides = array<i32>} : memref<8x128xf32, #tpu.memory_space<vmem>>, vector<8x128xf32>,
    return
  }
  func.func @transform_0(%arg0: i32) -> (i32, i32) {
    %c0_i32 = arith.constant 0 : i32
    %c0_i32_0 = arith.constant 0 : i32
    return %arg0, %c0_i32 : i32, i32
  }
  func.func @transform_1(%arg0: i32) -> (i32, i32) {
    %c0_i32 = arith.constant 0 : i32
    %c0_i32_0 = arith.constant 0 : i32
    %c0_i32_1 = arith.constant 0 : i32
    return %c0_i32, %c0_i32_0 : i32, i32
  }
  func.func @transform_2(%arg0: i32) -> (i32, i32) {
    %c0_i32 = arith.constant 0 : i32
    %c0_i32_0 = arith.constant 0 : i32
    %c0_i32_1 = arith.constant 0 : i32
    return %c0_i32, %c0_i32_0 : i32, i32
  }
  func.func @transform_3(%arg0: i32) -> (i32, i32) {
    %c0_i32 = arith.constant 0 : i32
    %c0_i32_0 = arith.constant 0 : i32
    return %arg0, %c0_i32 : i32, i32
  }
}

</mosaic_0001>

<bundles_post_ra>
// kernel: tpu_custom_call.1
= control target key start
LH: loop header
LB: loop body
LE: loop exit
PB: predicated region body
PF: predicated region fallthrough
CT: control target
= control target key end

     0   :  { %8 = vsyncpa [#allocation3], 0  ;;  %s935_s0 = inlined_call_operand.hbm [shape: f32[32,48], index: 0, kind: input, shape index: {}]   ;;  %s936_s1 = inlined_call_operand.hbm [shape: f32[48,128], index: 1, kind: input, shape index: {}]   ;;  %s937_s2 = inlined_call_operand.vmem [shape: f32[1,128], index: 2, kind: input, shape index: {}]   ;;  %s938_s3 = inlined_call_operand.hbm [shape: f32[32,128], index: 3, kind: output, shape index: {}]  }
   0x1   :  { %10 = vsyncpa [#allocation3 + $0x1], 0 }
   0x2   :  { %11 = vsyncpa [#allocation6], 0 }
   0x3   :  { %12 = vsyncpa [#allocation4], 0 }
   0x4   :  { %14 = vsyncpa [#allocation4 + $0x1], 0  ;;  %s757_s12 = smov 0   ;;  %s759_s13 = smov 0  }
   0x5   :  { %s761_s14 = smov 0   ;;  %s763_s15 = smov 0  }
   0x6 LB: > { %s130_s18 = sshll.u32 %s936_s1, 4  ;;  %s781_s19 = sadd.s32 4294967295, %s732_s15   ;;  %s732_s15 = sphi %s763_s15, %s947_s15   ;;  %s728_s14 = sphi %s761_s14, %s946_s14   ;;  %s724_s13 = sphi %s759_s13, %s945_s13   ;;  %s720_s12 = sphi %s757_s12, %s944_s12   ;;  %s131_s18 = int_to_ptr.hbm [resolvable:$true] %s130_s18 }
   0x7   : > { %p529_p0 = scmp.ge.s32.totalorder %s732_s15, 1  ;;  %p41_p1 = scmp.eq.s32.totalorder %s781_s19, 0 }
   0x8   : > { %p119_p2 = scmp.lt.s32.totalorder %s732_s15, 5  ;;  %s734_s21 = smov [#allocation5]  }
   0x9   : > { %s132_s22 = sshll.u32 %s734_s21, 4  ;;  %s735_s23 = smov 128   ;;  %s133_s22 = int_to_ptr.vmem [resolvable:$true] %s132_s22 }
   0xa   : > { %p786_p3 = pnand %p529_p0, %p119_p2  ;;  %s736_s24 = smov 8  }
   0xb   : > { %s528_s25 = sadd.s32 4294967294, %s732_s15   ;;  %s796_s26 = sadd.s32 1, %s732_s15  }
   0xc   : > { %p550_p4 = pneg %p786_p3  ;;  %s27_s27 = sadd.s32 1, %s728_s14 }
   0xd   : > { %s24_s28 = ssub.s32 %s732_s15, %s796_s26  ;;  %p34_p6 = scmp.ne.s32.totalorder %s728_s14, %s724_s13 }
   0xe   : > { %p551_p5 = pnand %p550_p4, %p41_p1  ;;  %p25_p7 = scmp.eq.s32.totalorder %s24_s28, 0 }
   0xf   : > { %p35_p8 = scmp.eq.s32.totalorder %s732_s15, 0  ;;  %p40_p9 = scmp.ne.s32.totalorder %s724_s13, %s720_s12 }
  0x10   : > { %553 = dma.hbm_to_vmem [thread:$0]  (!%p551_p5), %s131_s18, 768, %s133_s22, [#allocation6], %s735_s23, %s735_s23, %s736_s24  }
  0x11   : > { %p106_p10 = scmp.eq.s32.totalorder %s781_s19, 3  ;;  %p812_p11 = por %p41_p1, %p40_p9 }
  0x12   : > { %s808_s29 = scalar_select %p25_p7, %s728_s14, %s27_s27  }
  0x13   : > { %p816_p12 = por %p106_p10, %p34_p6  ;;  %p112_p13 = scmp.eq.s32.totalorder %s528_s25, 3 }
  0x14   : > { %p36_p0 = por %p35_p8, %p34_p6  ;;  %s149_s5 = sand.u32 1, %s728_s14  }
  0x15   : > { %p821_p2 = por %p112_p13, %p40_p9  ;;  %p563_p4 = scmp.lt.s32.totalorder %s732_s15, 4 }
  0x16   : > { %s532_s7 = sshll.u32 %s149_s5, 3  ;;  %s533_s8 = sshll.u32 %s732_s15, 3 }
  0x17   : > { %s157_s11 = scalar_lea.hbm %s935_s0, %s533_s8  ;;  %s153_s17 = scalar_lea.vmem [#allocation2], %s532_s7 }
  0x18   : > { %s159_s16 = sshll.u32 %s157_s11, 4  ;;  %s161_s18 = sshll.u32 %s153_s17, 4  ;;  %s160_s16 = int_to_ptr.hbm [resolvable:$true] %s159_s16  ;;  %s162_s18 = int_to_ptr.vmem [resolvable:$true] %s161_s18 }
  0x19   : > { %p830_p5 = pnand %p563_p4, %p36_p0  ;;  %s150_s22 = scalar_lea.sflag [#allocation3], %s149_s5 }
  0x1a   : > { %s632_s23 = sshra.s32 %s160_s16, 4  ;;  %s639_s28 = scalar_lea.hbm %s935_s0, 32  ;;  %s633_s23 = int_to_ptr.hbm [resolvable:$true] %s632_s23 }
  0x1b   : > { %s634_s24 = scalar_lea.hbm %s633_s23, 8  ;;  %p636_p7 = pneg %p830_p5 }
  0x1c   : > { %p635_p6 = scmp.ne.s32.totalorder %s633_s23, %s634_s24  ;;  %p640_p10 = scmp.lt.s32.totalorder %s633_s23, %s935_s0 }
  0x1d   : > { %p641_p13 = scmp.lt.s32.totalorder %s639_s28, %s634_s24 }
  0x1e   : > { %p637_p8 = pnand %p636_p7, %p635_p6 }
  0x1f   : > { %p642_p0 = por %p641_p13, %p640_p10 }
  0x20   : > { %p638_p9 = pneg %p637_p8 }
  0x22   : > { %p643_p4 = pnand %p642_p0, %p638_p9 }
  0x24   : > { %646 = shalt.err (!%p643_p4)
}
  0x25   : > { %557 = dma.hbm_to_vmem [thread:$0]  (!%p830_p5), %s160_s16, 128, %s162_s18, %s150_s22  }
  0x26   : > { %170 = sbr.rel (%p786_p3) target bundleno = 211 (0xd3), region = 32  ;;  %s847_s5 = sand.u32 (!%p786_p3), 1, %s724_s13  }
  0x27   : > { %s535_s9 = sshll.u32 (!%p786_p3), %s847_s5, 3  ;;  %s173_s10 = scalar_lea.sflag (!%p786_p3), [#allocation3], %s847_s5 }
  0x28   : > { %s176_s11 = scalar_lea.vmem (!%p786_p3), [#allocation2], %s535_s9 }
  0x2b   : > { %707 = dma.done.wait (%p812_p11), %s173_s10, 128  }
  0x2c   : > { %709 = vsyncadd (%p812_p11), %s173_s10, 4294967168 }
  0x2d   : > { %711 = dma.done.wait (%p41_p1), [#allocation6], 768  }
  0x2e   : > { %713 = vsyncadd (%p41_p1), [#allocation6], 4294966528  ;;  %v211_v0 = vld [vmem:[#allocation5 + $0x28] sm:$0xff]  ;;  %v210_v1 = vld [vmem:[#allocation5 + $0x20] sm:$0xff]  ;;  %vm216_vm0 = vcmask 392192   ;;  %s539_s16 = sshll.u32 %s781_s19, 3 }
  0x2f   : > { %v209_v2 = vld [vmem:[#allocation5 + $0x18] sm:$0xff]  ;;  %v861_v3 = vand.u32 4294901760, %v211_v0  ;;  %v863_v4 = vand.u32 4294901760, %v210_v1  ;;  %v208_v6 = vld [vmem:[#allocation5 + $0x10] sm:$0xff]  ;;  %v207_v7 = vld [vmem:[#allocation5 + $0x8] sm:$0xff]  ;;  %s443_s21 = scalar_lea.hbm %s938_s3, %s539_s16  ;;  %s204_s22 = scalar_lea.vmem [#allocation7], %s535_s9 }
  0x30   : > { %v865_v5 = vand.u32 4294901760, %v209_v2  ;;  %v206_v8 = vld [vmem:[#allocation5] sm:$0xff]  ;;  %v867_v9 = vand.u32 4294901760, %v208_v6  ;;  %v869_v10 = vand.u32 4294901760, %v207_v7  ;;  %v205_v12 = vld [vmem:[%s176_s11] sm:$0xff]  ;;  %s445_s23 = sshll.u32 %s204_s22, 4  ;;  %s446_s23 = int_to_ptr.vmem [resolvable:$true] %s445_s23 }
  0x31   : > { %v871_v11 = vand.u32 4294901760, %v206_v8  ;;  %231 = vmatpush.msra.mxu0 %v861_v3  ;;  %v262_v13 = vsub.f32 %v211_v0, %v861_v3  ;;  %v268_v14 = vsub.f32 %v210_v1, %v863_v4  ;;  %347 = vmatpush.msra.mxu3 %v861_v3  ;;  %v218_v16 = vsel %vm216_vm0, %v205_v12, 0  ;;  %v601_v43 = vld [vmem:[%s937_s2] ss:$0 sm:$0xff]  ;;  %s447_s24 = sshll.u32 %s443_s21, 4  ;;  %s433_s25 = scalar_lea.sflag [#allocation4], %s847_s5  ;;  %s448_s24 = int_to_ptr.hbm [resolvable:$true] %s447_s24 }
  0x32   : > { %v274_v15 = vsub.f32 %v209_v2, %v865_v5  ;;  %v280_v17 = vsub.f32 %v208_v6, %v867_v9  ;;  %v286_v18 = vsub.f32 %v207_v7, %v869_v10  ;;  %v242_v19 = vand.u32 4294901760, %v218_v16  ;;  %s676_s19 = sshra.s32 %s448_s24, 4  ;;  %s682_s8 = scalar_lea.hbm %s938_s3, 32  ;;  %s677_s19 = int_to_ptr.hbm [resolvable:$true] %s676_s19 }
  0x33   : > { %314 = vmatpush.msra.mxu2 %v262_v13  ;;  %233 = vmatpush.msra.mxu0 %v863_v4  ;;  %v263_v20 = vand.u32 4294901760, %v262_v13  ;;  %v269_v21 = vand.u32 4294901760, %v268_v14  ;;  %v292_v23 = vsub.f32 %v206_v8, %v871_v11  ;;  %s678_s27 = scalar_lea.hbm %s677_s19, 8  ;;  %p683_p5 = scmp.lt.s32.totalorder %s677_s19, %s938_s3 }
  0x34   : > { %v275_v22 = vand.u32 4294901760, %v274_v15  ;;  %349 = vmatpush.msra.mxu3 %v863_v4  ;;  %v281_v24 = vand.u32 4294901760, %v280_v17  ;;  %v243_v25 = vsub.f32 %v218_v16, %v242_v19  ;;  %v287_v29 = vand.u32 4294901760, %v286_v18  ;;  %p679_p1 = scmp.ne.s32.totalorder %s677_s19, %s678_s27  ;;  %p684_p6 = scmp.lt.s32.totalorder %s682_s8, %s678_s27 }
  0x35   : > { %v264_v26 = vsub.f32 %v262_v13, %v263_v20  ;;  %317 = vmatpush.msra.mxu2 %v268_v14  ;;  %235 = vmatpush.msra.mxu0 %v865_v5  ;;  %v270_v27 = vsub.f32 %v268_v14, %v269_v21  ;;  %v293_v34 = vand.u32 4294901760, %v292_v23 }
  0x36   : > { %v276_v28 = vsub.f32 %v274_v15, %v275_v22  ;;  %351 = vmatpush.msra.mxu3 %v865_v5  ;;  %v244_v30 = vand.u32 4294901760, %v243_v25  ;;  %v282_v33 = vsub.f32 %v280_v17, %v281_v24  ;;  %v288_v37 = vsub.f32 %v286_v18, %v287_v29  ;;  %p680_p3 = pnand %p679_p1, %p816_p12  ;;  %p685_p7 = por %p684_p6, %p683_p5 }
  0x37   : > { %v265_v31 = vand.u32 4294901760, %v264_v26  ;;  %v271_v32 = vand.u32 4294901760, %v270_v27  ;;  %320 = vmatpush.msra.mxu2 %v274_v15  ;;  %237 = vmatpush.msra.mxu0 %v867_v9  ;;  %v294_v39 = vsub.f32 %v292_v23, %v293_v34 }
  0x38   : > { %353 = vmatpush.msra.mxu3 %v867_v9  ;;  %v245_v35 = vsub.f32 %v243_v25, %v244_v30  ;;  %v277_v36 = vand.u32 4294901760, %v276_v28  ;;  %v283_v38 = vand.u32 4294901760, %v282_v33  ;;  %v289_v41 = vand.u32 4294901760, %v288_v37  ;;  %p681_p11 = pneg %p680_p3 }
  0x39   : > { %266 = vmatpush.msra.mxu1 %v265_v31  ;;  %323 = vmatpush.msra.mxu2 %v280_v17  ;;  %v295_v42 = vand.u32 4294901760, %v294_v39 }
  0x3a   : > { %239 = vmatpush.msra.mxu0 %v869_v10  ;;  %355 = vmatpush.msra.mxu3 %v869_v10  ;;  %v246_v40 = vand.u32 4294901760, %v245_v35  ;;  %p686_p8 = pnand %p685_p7, %p681_p11 }
  0x3b   : > { %272 = vmatpush.msra.mxu1 %v271_v32  ;;  %326 = vmatpush.msra.mxu2 %v286_v18 }
  0x3c   : > { %241 = vmatpush.msra.mxu0 %v871_v11  ;;  %357 = vmatpush.msra.mxu3 %v871_v11 }
  0x3d   : > { %278 = vmatpush.msra.mxu1 %v277_v36  ;;  %329 = vmatpush.msra.mxu2 %v292_v23 }
  0x3e   : > { %378 = vmatpush.msrb.mxu0 %v263_v20  ;;  %332 = vmatmul.f32.vlgmr.msra.gmra.mxu2 %v243_v25 }
  0x3f   : > { %284 = vmatpush.msra.mxu1 %v283_v38  ;;  %247 = vmatmul.f32.vlgmr.msra.gmra.mxu0 %v246_v40 }
  0x40   : > { %382 = vmatpush.msrb.mxu0 %v269_v21  ;;  %361 = vmatmul.f32.vlgmr.msra.gmra.mxu3 %v244_v30 }
  0x41   : > { %290 = vmatpush.msra.mxu1 %v289_v41 }
  0x42   : > { %386 = vmatpush.msrb.mxu0 %v275_v22 }
  0x43   : > { %296 = vmatpush.msra.mxu1 %v295_v42 }
  0x44   : > { %390 = vmatpush.msrb.mxu0 %v281_v24  ;;  %298 = vmatmul.f32.vlgmr.msra.gmra.mxu1 %v242_v19 }
  0x45   : > { %415 = vmatpush.msrb.mxu1 %v861_v3 }
  0x46   : > { %394 = vmatpush.msrb.mxu0 %v287_v29 }
  0x47   : > { %417 = vmatpush.msrb.mxu1 %v863_v4 }
  0x48   : > { %398 = vmatpush.msrb.mxu0 %v293_v34 }
  0x49   : > { %419 = vmatpush.msrb.mxu1 %v865_v5  ;;  %400 = vmatmul.f32.vlgmr.msrb.gmra.mxu0 %v242_v19 }
  0x4b   : > { %421 = vmatpush.msrb.mxu1 %v867_v9 }
  0x4d   : > { %423 = vmatpush.msrb.mxu1 %v869_v10 }
  0x4f   : > { %425 = vmatpush.msrb.mxu1 %v871_v11 }
  0x50   : > { %427 = vmatmul.f32.vlgmr.msrb.gmra.mxu1 %v242_v19 }
  0xbc   : > { %v248_v44 = vpop.f32.mrf.mxu0 }
  0xbd   : > { %v249_v45 = vadd.f32 %v601_v43, %v248_v44 }
  0xc1   : > { %v299_v46 = vpop.f32.mrf.mxu1  ;;  %v333_v47 = vpop.f32.mrf.mxu2 }
  0xc2   : > { %v300_v48 = vadd.f32 %v299_v46, %v249_v45 }
  0xc3   : > { %v362_v49 = vpop.f32.mrf.mxu3 }
  0xc4   : > { %v334_v50 = vadd.f32 %v333_v47, %v300_v48 }
  0xc6   : > { %v401_v51 = vpop.f32.mrf.mxu0  ;;  %v363_v52 = vadd.f32 %v362_v49, %v334_v50 }
  0xc8   : > { %v402_v53 = vadd.f32 %v401_v51, %v363_v52 }
  0xcd   : > { %v428_v54 = vpop.f32.mrf.mxu1 }
  0xce   : > { %v429_v55 = vadd.f32 %v428_v54, %v402_v53 }
  0xd0   : > { %431 = vst [vmem:[%s204_s22] sm:$0xff] %v429_v55 }
  0xd1   : > { %689 = shalt.err (!%p686_p8)
}
  0xd2   : > { %548 = dma.vmem_to_hbm [thread:$0]  (%p816_p12), %s446_s23, 128, %s448_s24, %s433_s25  }
  0xd3 PF: > { %p565_p9 = scmp.ge.s32.totalorder %s732_s15, 2  ;;  %s459_s5 = sand.u32 1, %s720_s12  }
  0xd4   : > { %s460_s11 = scalar_lea.sflag [#allocation4], %s459_s5 }
  0xd5   : > { %p559_p10 = pnand %p565_p9, %p821_p2 }
  0xd7   : > { %p560_p13 = pneg %p559_p10 }
  0xd9   : > { %715 = dma.done.wait (%p560_p13), %s460_s11, 128  }
  0xda   : > { %717 = vsyncadd (%p560_p13), %s460_s11, 4294967168  ;;  %p17_p0 = scmp.ge.s32.totalorder %s796_s26, 6   ;;  %s944_s12 = smov %s724_s13 }
  0xdb   : > { %s945_s13 = smov %s728_s14  ;;  %s946_s14 = smov %s808_s29 }
  0xdc   : > { %s947_s15 = smov %s796_s26  ;;  %19 = sbr.rel (!%p17_p0) target bundleno = 6 (0x6), region = 81 }
  0xe1   :  { %466 = vsyncpa [#allocation3], 1 }
  0xe2   :  { %468 = vsyncpa [#allocation3 + $0x1], 1 }
  0xe3   :  { %469 = vsyncpa [#allocation6], 1 }
  0xe4   :  { %470 = vsyncpa [#allocation4], 1 }
  0xe5   :  { %472 = vsyncpa [#allocation4 + $0x1], 1 }

</bundles_post_ra>
